<compile_context>
chip_gen: v6e
topology: v6e:2x2x1
jax: 0.10.0
libtpu: 0.0.40
codegen_flags: <defaults>
</compile_context>

<pallas_src>
import functools

import jax
import jax.numpy as jnp
from jax.experimental import pallas as pl
from jax.experimental.pallas import tpu as pltpu

EPS = 1e-07

_SUB = 512        # inner strip width (lanes); multiple of 128
_OUT_LANES = 128  # lane width of per-row partial outputs (chunked path)


def _vmem_plan():
    """Returns (working-set budget for 2 inputs x 2 buffers, vmem_limit_bytes)."""
    cap = 64 << 20                      # conservative default: v7x per-core VMEM
    try:
        cap = int(pltpu.get_tpu_info().vmem_capacity_bytes)
    except Exception:
        pass
    cap = max(32 << 20, min(cap, 128 << 20))
    # <=28 MiB working set is safe on v7x and costs ~nothing on v5e/v6e.
    work = max(8 << 20, min(cap // 3, 28 << 20))
    limit = max(32 << 20, min(cap // 2, work + (16 << 20)))
    return work, limit


def _pick_rows(nr):
    if nr <= 8:
        return nr          # full-extent row block (legal even when < 8)
    if nr < 16:
        return 8
    return 16


def _plan(nr, hw, itemsize_sum, max_tile_lanes):
    r = _pick_rows(nr)
    num_row_blocks = -(-nr // r)
    work, vmem_limit = _vmem_plan()
    small = hw < _SUB
    if small:
        tile_hw = hw
        total_chunks = 1
    else:
        lanes = work // (2 * r * itemsize_sum)    # 2 pipeline buffers, 2 inputs
        if max_tile_lanes is not None:
            lanes = min(lanes, max_tile_lanes)
        tile_hw = max(_SUB, (lanes // _SUB) * _SUB)
        tile_hw = min(tile_hw, (hw // _SUB) * _SUB)
        total_chunks = -(-hw // tile_hw)
    num_shards = 2 if (not small and num_row_blocks == 1
                       and total_chunks >= 2) else 1
    cps = -(-total_chunks // num_shards)          # chunks per shard
    return (r, num_row_blocks, tile_hw, total_chunks, num_shards, cps,
            vmem_limit, small)


def _dice_kernel(x_ref, t_ref, inter_ref, card_ref, *,
                 hw, tile_hw, sub, cps, total_chunks, small):
    """Grid = (row_blocks, hw_shards, chunks_per_shard); last axis reduces."""
    k = pl.program_id(2)

    @pl.when(k == 0)
    def _init():
        inter_ref[...] = jnp.zeros_like(inter_ref)
        card_ref[...] = jnp.zeros_like(card_ref)

    if small:
        # Single tiny full-extent chunk: whole-tile reduce, no masking needed.
        xv = x_ref[...].astype(jnp.float32)
        tv = t_ref[...].astype(jnp.float32)
        inter_ref[0] += jnp.sum(xv * tv, axis=1, keepdims=True)
        card_ref[0] += jnp.sum(xv + tv, axis=1, keepdims=True)
        return

    rows = x_ref.shape[0]
    sh = pl.program_id(1)
    g = sh * cps + k                                 # global spatial chunk
    c = jnp.minimum(g, total_chunks - 1)             # chunk actually fetched
    valid = jnp.minimum(hw - c * tile_hw, tile_hw)   # valid lanes in this tile
    valid = jnp.where(g >= total_chunks, 0, valid)   # duplicate chunk -> 0
    full_strips = valid // sub

    # Hot loop: unmasked lane-dense accumulation; carries stay in vregs.
    def body(j, carry):
        acc_i, acc_c = carry
        off = pl.multiple_of(j * sub, sub)
        xs = x_ref[:, pl.ds(off, sub)].astype(jnp.float32)
        ts = t_ref[:, pl.ds(off, sub)].astype(jnp.float32)
        return acc_i + xs * ts, acc_c + (xs + ts)

    zeros = jnp.zeros((rows, sub), jnp.float32)
    acc_i, acc_c = jax.lax.fori_loop(0, full_strips, body, (zeros, zeros))

    # Ragged / duplicate tail: one masked strip per grid step (off hot path).
    tail_off = pl.multiple_of(
        jnp.minimum(full_strips * sub, tile_hw - sub), sub)
    xs = x_ref[:, pl.ds(tail_off, sub)].astype(jnp.float32)
    ts = t_ref[:, pl.ds(tail_off, sub)].astype(jnp.float32)
    lane = tail_off + jax.lax.broadcasted_iota(jnp.int32, (rows, sub), 1)
    keep = jnp.logical_and(lane >= full_strips * sub, lane < valid)
    acc_i = acc_i + jnp.where(keep, xs * ts, 0.0)
    acc_c = acc_c + jnp.where(keep, xs + ts, 0.0)

    # Fold (rows, sub) -> (rows, OUT_LANES) with static vreg slices, then add
    # into the VMEM-resident output block (written back by Pallas when the
    # reduction axis finishes).
    out_lanes = inter_ref.shape[-1]
    ai = acc_i[:, :out_lanes]
    ac = acc_c[:, :out_lanes]
    for i in range(1, sub // out_lanes):
        ai = ai + acc_i[:, i * out_lanes:(i + 1) * out_lanes]
        ac = ac + acc_c[:, i * out_lanes:(i + 1) * out_lanes]
    inter_ref[0] += ai
    card_ref[0] += ac


@functools.partial(jax.jit, static_argnames=("_max_tile_lanes",))
def dice_loss(x, target, *, _max_tile_lanes=None):
    """1 - mean_c( 2*sum_{n,h,w}(x*t) / (sum_{n,h,w}(x+t) + eps) )."""
    assert x.shape == target.shape
    # Mirrors torch `target = target.type(x.type())`.
    # TODO(synk): for one-hot targets, shipping `target` as bfloat16 halves its
    # HBM stream (exact for 0/1 values); kept in x.dtype to match the module.
    target = target.astype(x.dtype)
    n, c, h, w = x.shape
    nr, hw = n * c, h * w

    # Free reshapes (NCHW contiguous): dense (N*C, H*W) view, no transpose/pad.
    xr = x.reshape(nr, hw)
    tr = target.reshape(nr, hw)

    (r, num_row_blocks, tile_hw, total_chunks, num_shards, cps,
     vmem_limit, small) = _plan(
         nr, hw, xr.dtype.itemsize + tr.dtype.itemsize, _max_tile_lanes)
    rows_pad = num_row_blocks * r
    out_lanes = 1 if small else _OUT_LANES

    if num_shards == 1:
        def in_map(rb, sh, k):
            return (rb, k)
    else:
        def in_map(rb, sh, k):
            return (rb, jnp.minimum(sh * cps + k, total_chunks - 1))

    def out_map(rb, sh, k):
        return (sh, rb, 0)

    kernel = functools.partial(
        _dice_kernel, hw=hw, tile_hw=tile_hw, sub=_SUB, cps=cps,
        total_chunks=total_chunks, small=small)

    flops = 4 * nr * hw
    bytes_accessed = nr * hw * (xr.dtype.itemsize + tr.dtype.itemsize)

    inter_p, card_p = pl.pallas_call(
        kernel,
        out_shape=(
            jax.ShapeDtypeStruct((num_shards, rows_pad, out_lanes), jnp.float32),
            jax.ShapeDtypeStruct((num_shards, rows_pad, out_lanes), jnp.float32),
        ),
        grid_spec=pltpu.PrefetchScalarGridSpec(
            num_scalar_prefetch=0,
            grid=(num_row_blocks, num_shards, cps),
            in_specs=[
                pl.BlockSpec((r, tile_hw), in_map),
                pl.BlockSpec((r, tile_hw), in_map),
            ],
            out_specs=[
                pl.BlockSpec((1, r, out_lanes), out_map),
                pl.BlockSpec((1, r, out_lanes), out_map),
            ],
        ),
        compiler_params=pltpu.CompilerParams(
            dimension_semantics=("parallel", "parallel", "arbitrary"),
            vmem_limit_bytes=vmem_limit,
        ),
        cost_estimate=pl.CostEstimate(
            flops=flops, transcendentals=0, bytes_accessed=bytes_accessed),
    )(xr, tr)

    # Tiny epilogue: shard + lane reduce, drop padding rows, per-class dice.
    inter = jnp.sum(inter_p, axis=(0, 2))[:nr].reshape(n, c).sum(axis=0)
    card = jnp.sum(card_p, axis=(0, 2))[:nr].reshape(n, c).sum(axis=0)
    dice = jnp.mean(2.0 * inter / (card + EPS))
    return (1.0 - dice).astype(x.dtype)


def _dice_loss_ref(x, target):
    """Pure-JAX reference mirroring the PyTorch forward."""
    target = target.astype(x.dtype)
    dims = (0,) + tuple(range(2, target.ndim))
    intersection = jnp.sum(x * target, axis=dims)
    cardinality = jnp.sum(x + target, axis=dims)
    return 1.0 - jnp.mean(2.0 * intersection / (cardinality + EPS))


def _make_inputs(key, n, c, h, w):
    kx, kt = jax.random.split(key)
    logits = jax.random.normal(kx, (n, c, h, w), dtype=jnp.float32)
    x = jax.nn.softmax(logits, axis=1)
    labels = jax.random.randint(kt, (n, h, w), 0, c)
    target = jnp.transpose(
        jax.nn.one_hot(labels, c, dtype=jnp.float32), (0, 3, 1, 2))
    return x, target


if __name__ == "__main__":
    key = jax.random.PRNGKey(0)

    # Primary small example (single full-extent chunk path).
    x, t = _make_inputs(key, 2, 4, 16, 16)
    out = jax.block_until_ready(dice_loss(x, t))
    ref = _dice_loss_ref(x, t)
    assert jnp.allclose(out, ref, atol=1e-5, rtol=1e-5), (out, ref)

    # Chunked path: ragged spatial tail + 2-way hw sharding (1 row block).
    x2, t2 = _make_inputs(key, 2, 4, 80, 80)
    out2 = jax.block_until_ready(dice_loss(x2, t2))
    ref2 = _dice_loss_ref(x2, t2)
    assert jnp.allclose(out2, ref2, atol=1e-5, rtol=1e-5), (out2, ref2)

    # Odd chunk count (duplicate-chunk masking) and N*C < 8 rows.
    x3, t3 = _make_inputs(key, 1, 4, 72, 64)
    out3 = jax.block_until_ready(dice_loss(x3, t3, _max_tile_lanes=1024))
    ref3 = _dice_loss_ref(x3, t3)
    assert jnp.allclose(out3, ref3, atol=1e-5, rtol=1e-5), (out3, ref3)

    print("KERNEL_OK")
</pallas_src>

<mosaic_0001>
module attributes {stable_mosaic.version = 11 : i64} {
  func.func @_dice_kernel(%arg0: i32, %arg1: i32, %arg2: i32, %arg3: memref<8x256xf32, #tpu.memory_space<vmem>>, %arg4: memref<8x256xf32, #tpu.memory_space<vmem>>, %arg5: memref<1x8x1xf32, #tpu.memory_space<vmem>>, %arg6: memref<1x8x1xf32, #tpu.memory_space<vmem>>) attributes {dimension_semantics = [#tpu.dimension_semantics<parallel>, #tpu.dimension_semantics<parallel>, #tpu.dimension_semantics<arbitrary>], iteration_bounds = array<i64: 1, 1, 1>, scalar_prefetch = 0 : i64, scratch_operands = 0 : i64, tpu.core_type = #tpu.core_type<tc>, window_params = [{transform_indices = @transform_0, window_bounds = array<i64: 8, 256>}, {transform_indices = @transform_1, window_bounds = array<i64: 8, 256>}, {transform_indices = @transform_2, window_bounds = array<i64: 1, 8, 1>}, {transform_indices = @transform_3, window_bounds = array<i64: 1, 8, 1>}]} {
    %c0_i32 = arith.constant 0 : i32
    %0 = arith.cmpi eq, %arg2, %c0_i32 : i32
    %1 = arith.extui %0 : i1 to i32
    %c0_i32_0 = arith.constant 0 : i32
    %2 = arith.cmpi ne, %1, %c0_i32_0 : i32
    scf.if %2 {
      %cst_17 = arith.constant 0.000000e+00 : f32
      %23 = vector.broadcast %cst_17 : f32 to vector<1x8x1xf32>
      %c0_18 = arith.constant 0 : index
      %c0_19 = arith.constant 0 : index
      %c0_20 = arith.constant 0 : index
      %24 = vector.load %arg5[%c0_18, %c0_19, %c0_20] : memref<1x8x1xf32, #tpu.memory_space<vmem>>, vector<1x8x1xf32>
      tpu.vector_store %arg5[%c0_18, %c0_19, %c0_20], %23 {strides = array<i32>} : memref<1x8x1xf32, #tpu.memory_space<vmem>>, vector<1x8x1xf32>,
      %cst_21 = arith.constant 0.000000e+00 : f32
      %25 = vector.broadcast %cst_21 : f32 to vector<1x8x1xf32>
      %c0_22 = arith.constant 0 : index
      %c0_23 = arith.constant 0 : index
      %c0_24 = arith.constant 0 : index
      %26 = vector.load %arg6[%c0_22, %c0_23, %c0_24] : memref<1x8x1xf32, #tpu.memory_space<vmem>>, vector<1x8x1xf32>
      tpu.vector_store %arg6[%c0_22, %c0_23, %c0_24], %25 {strides = array<i32>} : memref<1x8x1xf32, #tpu.memory_space<vmem>>, vector<1x8x1xf32>,
    } else {
    }
    %c0 = arith.constant 0 : index
    %c0_1 = arith.constant 0 : index
    %3 = vector.load %arg3[%c0, %c0_1] : memref<8x256xf32, #tpu.memory_space<vmem>>, vector<8x256xf32>
    %c0_2 = arith.constant 0 : index
    %c0_3 = arith.constant 0 : index
    %4 = vector.load %arg4[%c0_2, %c0_3] : memref<8x256xf32, #tpu.memory_space<vmem>>, vector<8x256xf32>
    %c0_4 = arith.constant 0 : index
    %c0_5 = arith.constant 0 : index
    %c0_6 = arith.constant 0 : index
    %5 = vector.load %arg5[%c0_4, %c0_5, %c0_6] : memref<1x8x1xf32, #tpu.memory_space<vmem>>, vector<1x8x1xf32>
    %6 = vector.shape_cast %5 : vector<1x8x1xf32> to vector<8x1xf32>
    %7 = arith.mulf %3, %4 : vector<8x256xf32>
    %cst = arith.constant dense<0.000000e+00> : vector<8xf32>
    %8 = vector.multi_reduction <add>, %7, %cst [1] : vector<8x256xf32> to vector<8xf32>
    %9 = vector.shape_cast %8 : vector<8xf32> to vector<8x1xf32>
    %10 = arith.addf %6, %9 : vector<8x1xf32>
    %c0_7 = arith.constant 0 : index
    %c0_8 = arith.constant 0 : index
    %c0_9 = arith.constant 0 : index
    %11 = vector.load %arg5[%c0_7, %c0_8, %c0_9] : memref<1x8x1xf32, #tpu.memory_space<vmem>>, vector<1x8x1xf32>
    %12 = vector.shape_cast %11 : vector<1x8x1xf32> to vector<8x1xf32>
    %13 = vector.shape_cast %10 : vector<8x1xf32> to vector<1x8x1xf32>
    tpu.vector_store %arg5[%c0_7, %c0_8, %c0_9], %13 {strides = array<i32>} : memref<1x8x1xf32, #tpu.memory_space<vmem>>, vector<1x8x1xf32>,
    %c0_10 = arith.constant 0 : index
    %c0_11 = arith.constant 0 : index
    %c0_12 = arith.constant 0 : index
    %14 = vector.load %arg6[%c0_10, %c0_11, %c0_12] : memref<1x8x1xf32, #tpu.memory_space<vmem>>, vector<1x8x1xf32>
    %15 = vector.shape_cast %14 : vector<1x8x1xf32> to vector<8x1xf32>
    %16 = arith.addf %3, %4 : vector<8x256xf32>
    %cst_13 = arith.constant dense<0.000000e+00> : vector<8xf32>
    %17 = vector.multi_reduction <add>, %16, %cst_13 [1] : vector<8x256xf32> to vector<8xf32>
    %18 = vector.shape_cast %17 : vector<8xf32> to vector<8x1xf32>
    %19 = arith.addf %15, %18 : vector<8x1xf32>
    %c0_14 = arith.constant 0 : index
    %c0_15 = arith.constant 0 : index
    %c0_16 = arith.constant 0 : index
    %20 = vector.load %arg6[%c0_14, %c0_15, %c0_16] : memref<1x8x1xf32, #tpu.memory_space<vmem>>, vector<1x8x1xf32>
    %21 = vector.shape_cast %20 : vector<1x8x1xf32> to vector<8x1xf32>
    %22 = vector.shape_cast %19 : vector<8x1xf32> to vector<1x8x1xf32>
    tpu.vector_store %arg6[%c0_14, %c0_15, %c0_16], %22 {strides = array<i32>} : memref<1x8x1xf32, #tpu.memory_space<vmem>>, vector<1x8x1xf32>,
    return
  }
  func.func @transform_0(%arg0: i32, %arg1: i32, %arg2: i32) -> (i32, i32) {
    %c0_i32 = arith.constant 0 : i32
    return %arg0, %arg2 : i32, i32
  }
  func.func @transform_1(%arg0: i32, %arg1: i32, %arg2: i32) -> (i32, i32) {
    %c0_i32 = arith.constant 0 : i32
    return %arg0, %arg2 : i32, i32
  }
  func.func @transform_2(%arg0: i32, %arg1: i32, %arg2: i32) -> (i32, i32, i32) {
    %c0_i32 = arith.constant 0 : i32
    %c0_i32_0 = arith.constant 0 : i32
    return %arg1, %arg0, %c0_i32 : i32, i32, i32
  }
  func.func @transform_3(%arg0: i32, %arg1: i32, %arg2: i32) -> (i32, i32, i32) {
    %c0_i32 = arith.constant 0 : i32
    %c0_i32_0 = arith.constant 0 : i32
    return %arg1, %arg0, %c0_i32 : i32, i32, i32
  }
}

</mosaic_0001>

<bundles_post_ra>
// kernel: dice_loss.1
= control target key start
LH: loop header
LB: loop body
LE: loop exit
PB: predicated region body
PF: predicated region fallthrough
CT: control target
= control target key end

     0   :  { %vm17_vm0 = vcmask 7168   ;;  %v50_v3 = vmov 0.0   ;;  %s105_s0 = inlined_call_operand.vmem [shape: f32[8,256], index: 0, kind: input, shape index: {}]   ;;  %s106_s1 = inlined_call_operand.vmem [shape: f32[8,256], index: 1, kind: input, shape index: {}]   ;;  %s107_s2 = inlined_call_operand.vmem [shape: f32[1,8,1], index: 2, kind: output, shape index: {0}]   ;;  %s108_s3 = inlined_call_operand.vmem [shape: f32[1,8,1], index: 3, kind: output, shape index: {1}]  }
   0x1   :  { %v20_v0 = vld [vmem:[%s105_s0] sm:$0xff]  ;;  %v21_v1 = vld [vmem:[%s105_s0 + $0x8] sm:$0xff]  ;;  %18 = vst.msk [vmem:[%s107_s2] sm:$0xff] %vm17_vm0, %v50_v3  ;;  %19 = vst.msk [vmem:[%s108_s3] sm:$0xff] %vm17_vm0, %v50_v3 }
   0x2   :  { %v22_v2 = vld [vmem:[%s106_s1] sm:$0xff]  ;;  %v23_v4 = vld [vmem:[%s106_s1 + $0x8] sm:$0xff] }
   0x3   :  { %v25_v5 = vmul.f32 %v22_v2, %v20_v0  ;;  %v26_v6 = vmul.f32 %v23_v4, %v21_v1  ;;  %v34_v7 = vadd.f32 %v22_v2, %v20_v0  ;;  %v35_v8 = vadd.f32 %v23_v4, %v21_v1 }
   0x5   :  { %v27_v9 = vadd.f32 %v26_v6, %v25_v5  ;;  %v36_v10 = vadd.f32 %v35_v8, %v34_v7 }
   0x7   :  { %28 = vadd.xlane.f32.xlu0 %v27_v9 }
   0x8   :  { %v24_v11 = vld [vmem:[%s107_s2] sm:$0xff] }
   0x9   :  { %v33_v14 = vld [vmem:[%s108_s3] sm:$0xff] }
   0xb   :  { %37 = vadd.xlane.f32.xlu0 %v36_v10 }
  0x90   :  { %v29_v12 = vpop.xlane.xlu0 %28 }
  0x91   :  { %v30_v13 = vadd.f32 %v29_v12, %v24_v11 }
  0x93   :  { %32 = vst.msk [vmem:[%s107_s2] sm:$0xff] %vm17_vm0, %v30_v13 }
  0x94   :  { %v38_v15 = vpop.xlane.xlu0 %37 }
  0x95   :  { %v39_v16 = vadd.f32 %v38_v15, %v33_v14 }
  0x97   :  { %40 = vst.msk [vmem:[%s108_s3] sm:$0xff] %vm17_vm0, %v39_v16 }

</bundles_post_ra>
